<compile_context>
chip_gen: v5e
topology: v5e:2x2
jax: 0.10.0
libtpu: 0.0.40
codegen_flags: <defaults>
</compile_context>

<pallas_src>
import functools
import numpy as np
import jax
import jax.numpy as jnp
from jax.experimental import pallas as pl
from jax.experimental.pallas import tpu as pltpu


# ----------------------------- module constants -----------------------------
EPS = 0.1                     # stand-in for args.eps (deterministic, in-script)
T_LAMBDA = 1.0
T_MEAN_X, T_MEAN_Y = 0.5, 0.5
F_MEAN_X, F_MEAN_Y = 0.3, 0.15
T_STD, T_CM = 0.75, EPS * (-0.5)
F_STD, F_CM = 0.85, 0.8
# self.w is defined in __init__ but unused in forward(); omitted on purpose.


def _inv_2x2(std, cm):
    cov = np.array([[std, cm], [cm, std]], dtype=np.float64)
    inv = np.linalg.inv(cov)
    # symmetric: return a (=inv[0,0]), b (=inv[0,1]), d (=inv[1,1])
    return float(inv[0, 0]), float(inv[0, 1]), float(inv[1, 1])


# ---------------------------------- kernel ----------------------------------
def _co_ga_loss_kernel(logits_ref, tgt_ref, out_ref, *, t_inv, f_inv,
                       t_mu, f_mu, t_lambda, n_rows, tile_rows):
    i = pl.program_id(0)

    logits = logits_ref[...].astype(jnp.float32)      # (TN, C), f32 compute
    tgt = tgt_ref[...]                                # (TN, 1), i32
    tn, c = logits.shape

    class_ids = jax.lax.broadcasted_iota(jnp.int32, (tn, c), 1)
    onehot = class_ids == tgt                         # (TN, C) bool

    # ---- stable softmax statistics (no full probs array) ----
    m = jnp.max(logits, axis=1, keepdims=True)        # (TN, 1)
    e = jnp.exp(logits - m)
    s = jnp.sum(e, axis=1, keepdims=True)             # (TN, 1)
    inv_s = 1.0 / s                                   # exact reciprocal

    logit_t = jnp.sum(jnp.where(onehot, logits, 0.0), axis=1, keepdims=True)
    ce = (m + jnp.log(s)) - logit_t                   # per-sample CE (TN, 1)

    # ---- p_t and top-2 probabilities without dividing the whole tile ----
    p_t = jnp.exp(logit_t - m) * inv_s
    max_p = inv_s                                     # max prob = exp(0)/s
    is_pt_max = logit_t == m                          # target logit is row max

    # first index attaining the row max (matches torch.topk tie behaviour)
    idx_first = jnp.min(
        jnp.where(logits == m, class_ids, jnp.int32(c)), axis=1, keepdims=True)
    masked_logits = jnp.where(class_ids == idx_first, -jnp.inf, logits)
    m2 = jnp.max(masked_logits, axis=1, keepdims=True)
    second_p = jnp.exp(m2 - m) * inv_s

    p_neg = jnp.where(is_pt_max, second_p, max_p)

    # ---- co_gau: per-sample 2D gaussian quadratic form (diag of D^T S^-1 D) --
    ta, tb, td = t_inv
    fa, fb, fd = f_inv
    dxt = p_t - t_mu[0]
    dyt = p_neg - t_mu[1]
    q_t = ta * dxt * dxt + 2.0 * tb * dxt * dyt + td * dyt * dyt
    t_value = t_lambda * jnp.exp(-0.5 * q_t)

    dxf = p_t - f_mu[0]
    dyf = p_neg - f_mu[1]
    q_f = fa * dxf * dxf + 2.0 * fb * dxf * dyf + fd * dyf * dyf
    f_value = jnp.exp(-0.5 * q_f)

    value = jnp.where(is_pt_max, t_value, f_value)
    adjusted = ce * value                             # (TN, 1)

    # mask rows past the true batch size (partial last tile / padded rows)
    row_ids = jax.lax.broadcasted_iota(jnp.int32, (tn, 1), 0) + i * tile_rows
    adjusted = jnp.where(row_ids < n_rows, adjusted, 0.0)

    # one partial sum per tile; final mean (sum / N) happens in the wrapper
    out_ref[...] = jnp.sum(adjusted, axis=0, keepdims=True).reshape(1, 1, 1)


# --------------------------------- wrapper ----------------------------------
def integrated_co_ga_loss(logits, targets, *, tile_rows=512):
    """logits: (N, C) f32/bf16, targets: (N,) int -> scalar f32 loss."""
    N, C = logits.shape
    tgt2d = targets.astype(jnp.int32).reshape(N, 1)

    # Row-tile: multiple of 8 sublanes when tiling, or the full batch if small.
    tn = min(tile_rows, N)
    if tn < N and tn % 8 != 0:
        tn = ((tn + 7) // 8) * 8
    tn = min(tn, N)
    num_tiles = pl.cdiv(N, tn)

    kernel = functools.partial(
        _co_ga_loss_kernel,
        t_inv=_inv_2x2(T_STD, T_CM),
        f_inv=_inv_2x2(F_STD, F_CM),
        t_mu=(T_MEAN_X, T_MEAN_Y),
        f_mu=(F_MEAN_X, F_MEAN_Y),
        t_lambda=T_LAMBDA,
        n_rows=N,
        tile_rows=tn,
    )

    itemsize = jnp.dtype(logits.dtype).itemsize
    cost = pl.CostEstimate(
        flops=8 * N * C,
        transcendentals=N * C,
        bytes_accessed=N * C * itemsize + N * 4 + num_tiles * 4,
    )

    partials = pl.pallas_call(
        kernel,
        out_shape=jax.ShapeDtypeStruct((num_tiles, 1, 1), jnp.float32),
        grid=(num_tiles,),
        in_specs=[
            pl.BlockSpec((tn, C), lambda i: (i, 0)),   # logits tile
            pl.BlockSpec((tn, 1), lambda i: (i, 0)),   # targets tile
        ],
        out_specs=pl.BlockSpec((1, 1, 1), lambda i: (i, 0, 0)),
        compiler_params=pltpu.CompilerParams(
            dimension_semantics=("parallel",),
            vmem_limit_bytes=32 * 1024 * 1024,
        ),
        cost_estimate=cost,
    )(logits, tgt2d)

    return jnp.sum(partials) / jnp.float32(N)


# ------------------------------ pure-JAX reference ---------------------------
def _reference(logits, targets):
    logits = logits.astype(jnp.float32)
    probs = jax.nn.softmax(logits, axis=1)
    logp = jax.nn.log_softmax(logits, axis=1)
    ce = -jnp.take_along_axis(logp, targets[:, None], axis=1)[:, 0]
    p_t = jnp.take_along_axis(probs, targets[:, None], axis=1)[:, 0]
    top2 = jax.lax.top_k(probs, 2)[0]
    max_p, second_p = top2[:, 0], top2[:, 1]
    is_pt_max = max_p == p_t
    p_neg = jnp.where(is_pt_max, second_p, max_p)

    def co_gau(p1, p2, std, cm, mu):
        inv = jnp.linalg.inv(jnp.array([[std, cm], [cm, std]], jnp.float32))
        dx, dy = p1 - mu[0], p2 - mu[1]
        q = inv[0, 0] * dx * dx + 2 * inv[0, 1] * dx * dy + inv[1, 1] * dy * dy
        return jnp.exp(-0.5 * q)

    t_value = T_LAMBDA * co_gau(p_t, p_neg, T_STD, T_CM, (T_MEAN_X, T_MEAN_Y))
    f_value = co_gau(p_t, p_neg, F_STD, F_CM, (F_MEAN_X, F_MEAN_Y))
    value = jnp.where(is_pt_max, t_value, f_value)
    return jnp.mean(ce * value)


if __name__ == "__main__":
    key = jax.random.PRNGKey(0)
    k1, k2 = jax.random.split(key)
    # 8 classes (matches len(self.w)); N chosen so the tiled path (3 tiles,
    # partial last tile) is exercised with tile_rows=16.
    N, C = 40, 8
    logits = jax.random.normal(k1, (N, C), dtype=jnp.float32)
    targets = jax.random.randint(k2, (N,), 0, C, dtype=jnp.int32)

    loss = integrated_co_ga_loss(logits, targets, tile_rows=16)
    jax.block_until_ready(loss)

    ref = _reference(logits, targets)
    assert jnp.allclose(loss, ref, rtol=1e-5, atol=1e-6), (loss, ref)
    print("KERNEL_OK")
</pallas_src>

<mosaic_0001>
module attributes {stable_mosaic.version = 11 : i64} {
  func.func @_co_ga_loss_kernel(%arg0: i32, %arg1: memref<16x8xf32, #tpu.memory_space<vmem>>, %arg2: memref<16x1xi32, #tpu.memory_space<vmem>>, %arg3: memref<1x1x1xf32, #tpu.memory_space<vmem>>) attributes {dimension_semantics = [#tpu.dimension_semantics<parallel>], iteration_bounds = array<i64: 3>, scalar_prefetch = 0 : i64, scratch_operands = 0 : i64, tpu.core_type = #tpu.core_type<tc>, window_params = [{transform_indices = @transform_0, window_bounds = array<i64: 16, 8>}, {transform_indices = @transform_1, window_bounds = array<i64: 16, 1>}, {transform_indices = @transform_2, window_bounds = array<i64: 1, 1, 1>}]} {
    %c0 = arith.constant 0 : index
    %c0_0 = arith.constant 0 : index
    %0 = vector.load %arg1[%c0, %c0_0] : memref<16x8xf32, #tpu.memory_space<vmem>>, vector<16x8xf32>
    %c0_1 = arith.constant 0 : index
    %c0_2 = arith.constant 0 : index
    %1 = vector.load %arg2[%c0_1, %c0_2] : memref<16x1xi32, #tpu.memory_space<vmem>>, vector<16x1xi32>
    %2 = tpu.iota {dimensions = array<i32: 1>} : vector<16x8xi32>
    %3 = vector.broadcast %1 : vector<16x1xi32> to vector<16x8xi32>
    %4 = arith.cmpi eq, %2, %3 : vector<16x8xi32>
    %cst = arith.constant dense<0xFF800000> : vector<16xf32>
    %5 = vector.multi_reduction <maximumf>, %0, %cst [1] : vector<16x8xf32> to vector<16xf32>
    %6 = vector.shape_cast %5 : vector<16xf32> to vector<16x1xf32>
    %7 = vector.broadcast %6 : vector<16x1xf32> to vector<16x8xf32>
    %8 = arith.subf %0, %7 : vector<16x8xf32>
    %9 = math.exp %8 : vector<16x8xf32>
    %cst_3 = arith.constant dense<0.000000e+00> : vector<16xf32>
    %10 = vector.multi_reduction <add>, %9, %cst_3 [1] : vector<16x8xf32> to vector<16xf32>
    %11 = vector.shape_cast %10 : vector<16xf32> to vector<16x1xf32>
    %cst_4 = arith.constant 1.000000e+00 : f32
    %12 = vector.broadcast %cst_4 : f32 to vector<16x1xf32>
    %13 = arith.divf %12, %11 : vector<16x1xf32>
    %cst_5 = arith.constant 0.000000e+00 : f32
    %14 = vector.broadcast %cst_5 : f32 to vector<16x8xf32>
    %15 = arith.select %4, %0, %14 : vector<16x8xi1>, vector<16x8xf32>
    %cst_6 = arith.constant dense<0.000000e+00> : vector<16xf32>
    %16 = vector.multi_reduction <add>, %15, %cst_6 [1] : vector<16x8xf32> to vector<16xf32>
    %17 = vector.shape_cast %16 : vector<16xf32> to vector<16x1xf32>
    %18 = math.log %11 : vector<16x1xf32>
    %19 = arith.addf %6, %18 : vector<16x1xf32>
    %20 = arith.subf %19, %17 : vector<16x1xf32>
    %21 = arith.subf %17, %6 : vector<16x1xf32>
    %22 = math.exp %21 : vector<16x1xf32>
    %23 = arith.mulf %22, %13 : vector<16x1xf32>
    %24 = arith.cmpf oeq, %17, %6 : vector<16x1xf32>
    %25 = vector.broadcast %6 : vector<16x1xf32> to vector<16x8xf32>
    %26 = arith.cmpf oeq, %0, %25 : vector<16x8xf32>
    %c8_i32 = arith.constant 8 : i32
    %27 = vector.broadcast %c8_i32 : i32 to vector<16x8xi32>
    %28 = arith.select %26, %2, %27 : vector<16x8xi1>, vector<16x8xi32>
    %cst_7 = arith.constant dense<2147483647> : vector<16xi32>
    %29 = vector.multi_reduction <minsi>, %28, %cst_7 [1] : vector<16x8xi32> to vector<16xi32>
    %30 = vector.shape_cast %29 : vector<16xi32> to vector<16x1xi32>
    %31 = vector.broadcast %30 : vector<16x1xi32> to vector<16x8xi32>
    %32 = arith.cmpi eq, %2, %31 : vector<16x8xi32>
    %cst_8 = arith.constant 0xFF800000 : f32
    %33 = vector.broadcast %cst_8 : f32 to vector<16x8xf32>
    %34 = arith.select %32, %33, %0 : vector<16x8xi1>, vector<16x8xf32>
    %cst_9 = arith.constant dense<0xFF800000> : vector<16xf32>
    %35 = vector.multi_reduction <maximumf>, %34, %cst_9 [1] : vector<16x8xf32> to vector<16xf32>
    %36 = vector.shape_cast %35 : vector<16xf32> to vector<16x1xf32>
    %37 = arith.subf %36, %6 : vector<16x1xf32>
    %38 = math.exp %37 : vector<16x1xf32>
    %39 = arith.mulf %38, %13 : vector<16x1xf32>
    %40 = arith.select %24, %39, %13 : vector<16x1xi1>, vector<16x1xf32>
    %cst_10 = arith.constant 5.000000e-01 : f32
    %41 = vector.broadcast %cst_10 : f32 to vector<16x1xf32>
    %42 = arith.subf %23, %41 : vector<16x1xf32>
    %cst_11 = arith.constant 5.000000e-01 : f32
    %43 = vector.broadcast %cst_11 : f32 to vector<16x1xf32>
    %44 = arith.subf %40, %43 : vector<16x1xf32>
    %cst_12 = arith.constant 1.33928573 : f32
    %45 = vector.broadcast %cst_12 : f32 to vector<16x1xf32>
    %46 = arith.mulf %45, %42 : vector<16x1xf32>
    %47 = arith.mulf %46, %42 : vector<16x1xf32>
    %cst_13 = arith.constant 0.178571433 : f32
    %48 = vector.broadcast %cst_13 : f32 to vector<16x1xf32>
    %49 = arith.mulf %48, %42 : vector<16x1xf32>
    %50 = arith.mulf %49, %44 : vector<16x1xf32>
    %51 = arith.addf %47, %50 : vector<16x1xf32>
    %cst_14 = arith.constant 1.33928573 : f32
    %52 = vector.broadcast %cst_14 : f32 to vector<16x1xf32>
    %53 = arith.mulf %52, %44 : vector<16x1xf32>
    %54 = arith.mulf %53, %44 : vector<16x1xf32>
    %55 = arith.addf %51, %54 : vector<16x1xf32>
    %cst_15 = arith.constant -5.000000e-01 : f32
    %56 = vector.broadcast %cst_15 : f32 to vector<16x1xf32>
    %57 = arith.mulf %56, %55 : vector<16x1xf32>
    %58 = math.exp %57 : vector<16x1xf32>
    %cst_16 = arith.constant 1.000000e+00 : f32
    %59 = vector.broadcast %cst_16 : f32 to vector<16x1xf32>
    %60 = arith.mulf %59, %58 : vector<16x1xf32>
    %cst_17 = arith.constant 3.000000e-01 : f32
    %61 = vector.broadcast %cst_17 : f32 to vector<16x1xf32>
    %62 = arith.subf %23, %61 : vector<16x1xf32>
    %cst_18 = arith.constant 1.500000e-01 : f32
    %63 = vector.broadcast %cst_18 : f32 to vector<16x1xf32>
    %64 = arith.subf %40, %63 : vector<16x1xf32>
    %cst_19 = arith.constant 10.30303 : f32
    %65 = vector.broadcast %cst_19 : f32 to vector<16x1xf32>
    %66 = arith.mulf %65, %62 : vector<16x1xf32>
    %67 = arith.mulf %66, %62 : vector<16x1xf32>
    %cst_20 = arith.constant -19.39394 : f32
    %68 = vector.broadcast %cst_20 : f32 to vector<16x1xf32>
    %69 = arith.mulf %68, %62 : vector<16x1xf32>
    %70 = arith.mulf %69, %64 : vector<16x1xf32>
    %71 = arith.addf %67, %70 : vector<16x1xf32>
    %cst_21 = arith.constant 10.30303 : f32
    %72 = vector.broadcast %cst_21 : f32 to vector<16x1xf32>
    %73 = arith.mulf %72, %64 : vector<16x1xf32>
    %74 = arith.mulf %73, %64 : vector<16x1xf32>
    %75 = arith.addf %71, %74 : vector<16x1xf32>
    %cst_22 = arith.constant -5.000000e-01 : f32
    %76 = vector.broadcast %cst_22 : f32 to vector<16x1xf32>
    %77 = arith.mulf %76, %75 : vector<16x1xf32>
    %78 = math.exp %77 : vector<16x1xf32>
    %79 = arith.select %24, %60, %78 : vector<16x1xi1>, vector<16x1xf32>
    %80 = arith.mulf %20, %79 : vector<16x1xf32>
    %81 = tpu.iota {dimensions = array<i32: 0>} : vector<16x1xi32>
    %c16_i32 = arith.constant 16 : i32
    %82 = arith.muli %arg0, %c16_i32 : i32
    %83 = vector.broadcast %82 : i32 to vector<16x1xi32>
    %84 = arith.addi %81, %83 : vector<16x1xi32>
    %c40_i32 = arith.constant 40 : i32
    %85 = vector.broadcast %c40_i32 : i32 to vector<16x1xi32>
    %86 = arith.cmpi slt, %84, %85 : vector<16x1xi32>
    %cst_23 = arith.constant 0.000000e+00 : f32
    %87 = vector.broadcast %cst_23 : f32 to vector<16x1xf32>
    %88 = arith.select %86, %80, %87 : vector<16x1xi1>, vector<16x1xf32>
    %cst_24 = arith.constant dense<0.000000e+00> : vector<1xf32>
    %89 = vector.multi_reduction <add>, %88, %cst_24 [0] : vector<16x1xf32> to vector<1xf32>
    %90 = vector.shape_cast %89 : vector<1xf32> to vector<1x1xf32>
    %91 = vector.shape_cast %90 : vector<1x1xf32> to vector<1x1x1xf32>
    %c0_25 = arith.constant 0 : index
    %c0_26 = arith.constant 0 : index
    %c0_27 = arith.constant 0 : index
    %92 = vector.load %arg3[%c0_25, %c0_26, %c0_27] : memref<1x1x1xf32, #tpu.memory_space<vmem>>, vector<1x1x1xf32>
    tpu.vector_store %arg3[%c0_25, %c0_26, %c0_27], %91 {strides = array<i32>} : memref<1x1x1xf32, #tpu.memory_space<vmem>>, vector<1x1x1xf32>,
    return
  }
  func.func @transform_0(%arg0: i32) -> (i32, i32) {
    %c0_i32 = arith.constant 0 : i32
    %c0_i32_0 = arith.constant 0 : i32
    return %arg0, %c0_i32 : i32, i32
  }
  func.func @transform_1(%arg0: i32) -> (i32, i32) {
    %c0_i32 = arith.constant 0 : i32
    %c0_i32_0 = arith.constant 0 : i32
    return %arg0, %c0_i32 : i32, i32
  }
  func.func @transform_2(%arg0: i32) -> (i32, i32, i32) {
    %c0_i32 = arith.constant 0 : i32
    %c0_i32_0 = arith.constant 0 : i32
    %c0_i32_1 = arith.constant 0 : i32
    return %arg0, %c0_i32, %c0_i32_0 : i32, i32, i32
  }
}

</mosaic_0001>

<bundles_post_ra>
// kernel: tpu_custom_call.1
= control target key start
LH: loop header
LB: loop body
LE: loop exit
PB: predicated region body
PF: predicated region fallthrough
CT: control target
= control target key end

     0   :  { %s565_s9 = smov 0   ;;  %s679_s0 = inlined_call_operand.vmem [shape: f32[40,8], index: 0, kind: input, shape index: {}]   ;;  %s680_s1 = inlined_call_operand.vmem [shape: s32[40,1], index: 1, kind: input, shape index: {}]   ;;  %s681_s2 = inlined_call_operand.vmem [shape: f32[3,1,1], index: 2, kind: output, shape index: {}]  }
   0x1 LB: > { %s571_s10 = sadd.s32 4294967295, %s547_s9   ;;  %p486_p0 = scmp.ge.s32.totalorder %s547_s9, 1  ;;  %s547_s9 = sphi %s565_s9, %s12_s9  }
   0x2   : > { %p140_p1 = scmp.lt.s32.totalorder %s547_s9, 4 }
   0x4   : > { %p141_p2 = pnand %p486_p0, %p140_p1 }
   0x5   : > { %s487_s11 = sshll.u32 (!%p141_p2), %s571_s10, 1  ;;  %s499_s19 = sshll.u32 (!%p141_p2), %s571_s10, 4 }
   0x6   : > { %144 = sbr.rel (%p141_p2) target bundleno = 557 (0x22d), region = 28  ;;  %p178_p3 = scmp.lt.s32.totalorder (!%p141_p2), %s487_s11, 4 }
   0x7   : > { %p201_p4 = scmp.lt.s32.totalorder (!%p141_p2), %s571_s10, 2 }
   0xb   : > { %s683_s11 = smov (!%p178_p3, %s487_s11), 4  ;;  %vm218_vm0 = vcmask 64512   ;;  %v549_v5 = vmov 0   ;;  %v208_v6 = vlaneseq  ;;  %s685_s10 = smov (!%p201_p4, %s571_s10), 2 }
   0xc   : > { %s488_s12 = sshll.u32 %s683_s11, 3  ;;  %511 = vset.pattern.permute.xlu0 %v549_v5  ;;  %512 = vset.pattern.permute.xlu1 %v549_v5  ;;  %s203_s22 = scalar_lea.vmem %s681_s2, %s685_s10 }
   0xd   : > { %s181_s15 = scalar_lea.vmem %s679_s0, %s488_s12  ;;  %s195_s18 = scalar_lea.vmem %s680_s1, %s488_s12  ;;  %v591_v7 = vand.u32 127, %v208_v6 }
   0xe   : > { %v579_v0 = vld [vmem:[%s181_s15] sm:$0xff]  ;;  %v583_v2 = vld [vmem:[%s181_s15 + $0x8] sm:$0xff] }
   0xf   : > { %v219_v1 = vsel %vm218_vm0, %v579_v0, -inf  ;;  %v222_v3 = vsel %vm218_vm0, %v583_v2, -inf  ;;  %v206_v4 = vld [vmem:[%s195_s18] sm:$0xff]  ;;  %v207_v18 = vld [vmem:[%s195_s18 + $0x8] sm:$0xff] }
  0x10   : > { %220 = vmax.xlane.f32.xlu0 %v219_v1 }
  0x18   : > { %223 = vmax.xlane.f32.xlu0 %v222_v3 }
  0x2c   : > { %211 = vperm.xlu0 %511, %v206_v4  }
  0x83   : > { %v593_v8 = vpop.xlane.xlu0 %220 }
  0x84   : > { %vm293_vm1 = vcmp.eq.f32.partialorder %v579_v0, %v593_v8  ;;  %v225_v22 = vsub.f32 %v579_v0, %v593_v8 }
  0x85   : > { %v295_v9 = vsel %vm293_vm1, %v591_v7, 8 }
  0x86   : > { %v297_v10 = vsel %vm218_vm0, %v295_v9, 2147483647  ;;  %v227_v25 = vmul.f32 1.442695, %v225_v22 }
  0x87   : > { %v299_v11 = vshra.s32 %v297_v10, 16  ;;  %v298_v19 = vand.u32 65535, %v297_v10 }
  0x88   : > { %513 = vpow2.f32 %v227_v25 }
  0x89   : > { %v301_v12 = vcvt.s32.f32 %v299_v11  ;;  %v300_v21 = vcvt.s32.f32 %v298_v19 }
  0x8b   : > { %302 = vmin.xlane.f32.xlu1 %v301_v12  ;;  %v599_v13 = vpop.xlane.xlu0 %223 }
  0x8c   : > { %vm294_vm2 = vcmp.eq.f32.partialorder %v583_v2, %v599_v13  ;;  %v226_v28 = vsub.f32 %v583_v2, %v599_v13 }
  0x8d   : > { %v296_v14 = vsel %vm294_vm2, %v591_v7, 8 }
  0x8e   : > { %v312_v15 = vsel %vm218_vm0, %v296_v14, 2147483647  ;;  %v229_v30 = vmul.f32 1.442695, %v226_v28  ;;  %v514_v31 = vpop.eup %513 }
  0x8f   : > { %v314_v16 = vshra.s32 %v312_v15, 16  ;;  %v313_v24 = vand.u32 65535, %v312_v15  ;;  %v231_v32 = vsel %vm218_vm0, %v514_v31, 0.0 }
  0x90   : > { %515 = vpow2.f32 %v229_v30 }
  0x91   : > { %v316_v17 = vcvt.s32.f32 %v314_v16  ;;  %v315_v27 = vcvt.s32.f32 %v313_v24 }
  0x93   : > { %317 = vmin.xlane.f32.xlu1 %v316_v17 }
  0x96   : > { %v516_v33 = vpop.eup %515 }
  0x97   : > { %v234_v35 = vsel %vm218_vm0, %v516_v33, 0.0 }
  0x9e   : > { %v212_v34 = vpop.permute.xlu0 %211 }
  0x9f   : > { %vm216_vm5 = vcmp.eq.s32.totalorder %v591_v7, %v212_v34 }
  0xa0   : > { %v267_v36 = vsel %vm216_vm5, %v579_v0, 0.0  ;;  %vm421_vm5 = vcmask 0  }
  0xa1   : > { %v269_v37 = vsel %vm218_vm0, %v267_v36, 0.0 }
  0xac   : > { %214 = vperm.xlu1 %512, %v207_v18  }
  0xfe   : > { %v303_v20 = vpop.xlane.xlu1 %302 }
  0xff   : > { %vm304_vm3 = vcmp.eq.f32.partialorder %v301_v12, %v303_v20  ;;  %v309_v41 = vcvt.f32.s32 %v303_v20 }
 0x100   : > { %v305_v23 = vsel %vm304_vm3, %v300_v21, inf }
 0x101   : > { %306 = vmin.xlane.f32.xlu2 %v305_v23  ;;  %v310_v43 = vshll.u32 %v309_v41, 16 }
 0x106   : > { %v318_v26 = vpop.xlane.xlu1 %317 }
 0x107   : > { %vm319_vm4 = vcmp.eq.f32.partialorder %v316_v17, %v318_v26  ;;  %v324_v46 = vcvt.f32.s32 %v318_v26 }
 0x108   : > { %v320_v29 = vsel %vm319_vm4, %v315_v27, inf }
 0x109   : > { %321 = vmin.xlane.f32.xlu2 %v320_v29  ;;  %v325_v50 = vshll.u32 %v324_v46, 16 }
 0x111   : > { %232 = vadd.xlane.f32.xlu2 %v231_v32 }
 0x119   : > { %235 = vadd.xlane.f32.xlu2 %v234_v35 }
 0x11e   : > { %v215_v38 = vpop.permute.xlu1 %214 }
 0x11f   : > { %vm217_vm6 = vcmp.eq.s32.totalorder %v591_v7, %v215_v38 }
 0x120   : > { %v268_v39 = vsel %vm217_vm6, %v583_v2, 0.0 }
 0x121   : > { %270 = vadd.xlane.f32.xlu2 %v269_v37  ;;  %v272_v40 = vsel %vm218_vm0, %v268_v39, 0.0 }
 0x129   : > { %273 = vadd.xlane.f32.xlu2 %v272_v40 }
 0x174   : > { %v307_v42 = vpop.xlane.xlu2 %306 }
 0x175   : > { %v308_v44 = vcvt.f32.s32 %v307_v42 }
 0x177   : > { %v311_v45 = vadd.s32 %v310_v43, %v308_v44 }
 0x179   : > { %vm327_vm7 = vcmp.eq.s32.totalorder %v591_v7, %v311_v45 }
 0x17a   : > { %v329_v47 = vsel %vm327_vm7, -inf, %v579_v0 }
 0x17b   : > { %v331_v48 = vsel %vm218_vm0, %v329_v47, -inf }
 0x17c   : > { %332 = vmax.xlane.f32.xlu1 %v331_v48  ;;  %v322_v49 = vpop.xlane.xlu2 %321 }
 0x17d   : > { %v323_v51 = vcvt.f32.s32 %v322_v49 }
 0x17f   : > { %v326_v52 = vadd.s32 %v325_v50, %v323_v51 }
 0x181   : > { %vm328_vm8 = vcmp.eq.s32.totalorder %v591_v7, %v326_v52 }
 0x182   : > { %v330_v53 = vsel %vm328_vm8, -inf, %v583_v2 }
 0x183   : > { %v334_v54 = vsel %vm218_vm0, %v330_v53, -inf }
 0x184   : > { %335 = vmax.xlane.f32.xlu2 %v334_v54  ;;  %v623_v55 = vpop.xlane.xlu2 %232 }
 0x185   : > { %517 = vrcp.f32 %v623_v55  ;;  %v248_v7 = vand.u32 2147483648, %v623_v55  ;;  %vm242_vm10 = vweird.f32 %v623_v55  ;;  %v246_v9 = vand.u32 2147483647, %v623_v55 }
 0x187   : > { %v249_v16 = vor.u32 1.1754944e-38, %v248_v7  ;;  %vm247_vm12 = vcmp.eq.f32.partialorder %v246_v9, 8.507059e+37 }
 0x18b   : > { %v518_v57 = vpop.eup %517 }
 0x18c   : > { %v625_v56 = vpop.xlane.xlu2 %235  ;;  %v238_v59 = vmul.f32 %v518_v57, %v623_v55  ;;  %vm243_vm9 = vweird.f32 %v518_v57 }
 0x18d   : > { %519 = vrcp.f32 %v625_v56  ;;  %vm244_vm11 = vmor %vm242_vm10, %vm243_vm9  ;;  %v263_v22 = vand.u32 2147483648, %v625_v56  ;;  %vm257_vm14 = vweird.f32 %v625_v56  ;;  %v261_v23 = vand.u32 2147483647, %v625_v56 }
 0x18e   : > { %v239_v61 = vsub.f32 1.0, %v238_v59 }
 0x18f   : > { %v264_v29 = vor.u32 1.1754944e-38, %v263_v22  ;;  %vm262_vm0 = vcmp.eq.f32.partialorder %v261_v23, 8.507059e+37 }
 0x190   : > { %v240_v0 = vmul.f32 %v518_v57, %v239_v61 }
 0x192   : > { %v241_v4 = vadd.f32 %v518_v57, %v240_v0 }
 0x193   : > { %v520_v62 = vpop.eup %519 }
 0x194   : > { %v628_v58 = vpop.xlane.xlu2 %270  ;;  %v253_v1 = vmul.f32 %v520_v62, %v625_v56  ;;  %v245_v14 = vsel %vm244_vm11, %v518_v57, %v241_v4  ;;  %vm258_vm13 = vweird.f32 %v520_v62 }
 0x195   : > { %v283_v60 = vsub.f32 %v628_v58, %v593_v8  ;;  %v250_v18 = vsel %vm247_vm12, %v249_v16, %v245_v14  ;;  %vm259_vm15 = vmor %vm257_vm14, %vm258_vm13  ;;  %vm291_vm1 = vcmp.eq.f32.partialorder %v628_v58, %v593_v8 }
 0x196   : > { %v254_v5 = vsub.f32 1.0, %v253_v1 }
 0x197   : > { %v285_v63 = vmul.f32 1.442695, %v283_v60 }
 0x198   : > { %v255_v11 = vmul.f32 %v520_v62, %v254_v5 }
 0x199   : > { %521 = vpow2.f32 %v285_v63 }
 0x19a   : > { %v256_v20 = vadd.f32 %v520_v62, %v255_v11 }
 0x19c   : > { %v635_v2 = vpop.xlane.xlu2 %273  ;;  %v260_v26 = vsel %vm259_vm15, %v520_v62, %v256_v20 }
 0x19d   : > { %v284_v3 = vsub.f32 %v635_v2, %v599_v13  ;;  %v265_v32 = vsel %vm262_vm0, %v264_v29, %v260_v26  ;;  %vm292_vm2 = vcmp.eq.f32.partialorder %v635_v2, %v599_v13 }
 0x19f   : > { %v287_v10 = vmul.f32 1.442695, %v284_v3  ;;  %v522_v15 = vpop.eup %521 }
 0x1a0   : > { %v289_v21 = vmul.f32 %v522_v15, %v250_v18 }
 0x1a1   : > { %523 = vpow2.f32 %v287_v10 }
 0x1a2   : > { %v491_v24 = vadd.f32 -0.5, %v289_v21  ;;  %v495_v25 = vadd.f32 -0.3, %v289_v21 }
 0x1a4   : > { %v351_v35 = vmul.f32 1.3392857, %v491_v24  ;;  %v377_v36 = vmul.f32 10.30303, %v495_v25  ;;  %v355_v39 = vmul.f32 0.17857143, %v491_v24 }
 0x1a5   : > { %v381_v42 = vmul.f32 -19.39394, %v495_v25 }
 0x1a6   : > { %v353_v43 = vmul.f32 %v491_v24, %v351_v35  ;;  %v379_v44 = vmul.f32 %v495_v25, %v377_v36 }
 0x1a7   : > { %v524_v28 = vpop.eup %523 }
 0x1a8   : > { %v290_v37 = vmul.f32 %v524_v28, %v265_v32  ;;  %v404_v28 = vshrl.u32 %v208_v6, 7 }
 0x1aa   : > { %v492_v45 = vadd.f32 -0.5, %v290_v37  ;;  %v496_v50 = vadd.f32 -0.3, %v290_v37 }
 0x1ac   : > { %v352_v62 = vmul.f32 1.3392857, %v492_v45  ;;  %v356_v63 = vmul.f32 0.17857143, %v492_v45  ;;  %v378_v0 = vmul.f32 10.30303, %v496_v50 }
 0x1ad   : > { %v382_v9 = vmul.f32 -19.39394, %v496_v50 }
 0x1ae   : > { %v354_v11 = vmul.f32 %v492_v45, %v352_v62  ;;  %v380_v16 = vmul.f32 %v496_v50, %v378_v0 }
 0x1ef   : > { %v333_v12 = vpop.xlane.xlu1 %332 }
 0x1f0   : > { %v337_v17 = vsub.f32 %v333_v12, %v593_v8 }
 0x1f2   : > { %v339_v19 = vmul.f32 1.442695, %v337_v17 }
 0x1f4   : > { %525 = vpow2.f32 %v339_v19 }
 0x1f7   : > { %v336_v27 = vpop.xlane.xlu2 %335 }
 0x1f8   : > { %v338_v30 = vsub.f32 %v336_v27, %v599_v13 }
 0x1fa   : > { %v526_v31 = vpop.eup %525  ;;  %v341_v33 = vmul.f32 1.442695, %v338_v30 }
 0x1fb   : > { %v343_v34 = vmul.f32 %v526_v31, %v250_v18 }
 0x1fc   : > { %527 = vpow2.f32 %v341_v33 }
 0x1fd   : > { %v345_v38 = vsel %vm291_vm1, %v343_v34, %v250_v18  ;;  %529 = vlog2.f32 %v623_v55  ;;  %v407_v34 = vstv %s499_s19 }
 0x1fe   : > { %v493_v40 = vadd.f32 -0.5, %v345_v38  ;;  %v497_v41 = vadd.f32 -0.15, %v345_v38  ;;  %531 = vlog2.f32 %v625_v56  ;;  %v405_v56 = vadd.s32 8, %v404_v28 }
 0x1ff   : > { %v408_v37 = vadd.s32 %v407_v34, %v404_v28 }
 0x200   : > { %v357_v46 = vmul.f32 %v493_v40, %v355_v39  ;;  %v361_v47 = vmul.f32 1.3392857, %v493_v40  ;;  %v383_v48 = vmul.f32 %v497_v41, %v381_v42  ;;  %v387_v49 = vmul.f32 10.30303, %v497_v41 }
 0x201   : > { %v409_v38 = vadd.s32 %v407_v34, %v405_v56  ;;  %vm410_vm3 = vcmp.lt.s32.totalorder %v408_v37, 40 }
 0x202   : > { %v528_v51 = vpop.eup %527  ;;  %v359_v52 = vadd.f32 %v357_v46, %v353_v43  ;;  %v363_v53 = vmul.f32 %v493_v40, %v361_v47  ;;  %v385_v54 = vadd.f32 %v383_v48, %v379_v44  ;;  %v389_v57 = vmul.f32 %v497_v41, %v387_v49 }
 0x203   : > { %v344_v59 = vmul.f32 %v528_v51, %v265_v32  ;;  %v530_v24 = vpop.eup %529  ;;  %vm411_vm4 = vcmp.lt.s32.totalorder %v409_v38, 40 }
 0x204   : > { %v365_v60 = vadd.f32 %v363_v53, %v359_v52  ;;  %v391_v61 = vadd.f32 %v389_v57, %v385_v54  ;;  %v532_v27 = vpop.eup %531  ;;  %v276_v30 = vmul.f32 0.6931472, %v530_v24 }
 0x205   : > { %v346_v1 = vsel %vm292_vm2, %v344_v59, %v265_v32  ;;  %v278_v35 = vmul.f32 0.6931472, %v532_v27 }
 0x206   : > { %v367_v3 = vmul.f32 -0.5, %v365_v60  ;;  %v393_v4 = vmul.f32 -0.5, %v391_v61  ;;  %v494_v5 = vadd.f32 -0.5, %v346_v1  ;;  %v498_v7 = vadd.f32 -0.15, %v346_v1 }
 0x207   : > { %v279_v36 = vadd.f32 %v276_v30, %v593_v8  ;;  %v280_v40 = vadd.f32 %v278_v35, %v599_v13 }
 0x208   : > { %v369_v10 = vmul.f32 1.442695, %v367_v3  ;;  %v358_v12 = vmul.f32 %v494_v5, %v356_v63  ;;  %v362_v14 = vmul.f32 1.3392857, %v494_v5  ;;  %v395_v15 = vmul.f32 1.442695, %v393_v4 }
 0x209   : > { %v384_v17 = vmul.f32 %v498_v7, %v382_v9  ;;  %v388_v18 = vmul.f32 10.30303, %v498_v7  ;;  %v281_v39 = vsub.f32 %v279_v36, %v628_v58  ;;  %v282_v43 = vsub.f32 %v280_v40, %v635_v2 }
 0x20a   : > { %v360_v19 = vadd.f32 %v358_v12, %v354_v11  ;;  %v364_v20 = vmul.f32 %v494_v5, %v362_v14  ;;  %533 = vpow2.f32 %v369_v10 }
 0x20b   : > { %v386_v21 = vadd.f32 %v384_v17, %v380_v16  ;;  %v390_v22 = vmul.f32 %v498_v7, %v388_v18  ;;  %535 = vpow2.f32 %v395_v15 }
 0x20c   : > { %v366_v23 = vadd.f32 %v364_v20, %v360_v19 }
 0x20d   : > { %v392_v55 = vadd.f32 %v390_v22, %v386_v21 }
 0x20e   : > { %v368_v25 = vmul.f32 -0.5, %v366_v23 }
 0x20f   : > { %v394_v26 = vmul.f32 -0.5, %v392_v55 }
 0x210   : > { %v371_v29 = vmul.f32 1.442695, %v368_v25  ;;  %v534_v32 = vpop.eup %533 }
 0x211   : > { %v397_v31 = vmul.f32 1.442695, %v394_v26  ;;  %v536_v33 = vpop.eup %535 }
 0x212   : > { %537 = vpow2.f32 %v371_v29  ;;  %v399_v6 = vsel %vm291_vm1, %v534_v32, %v536_v33 }
 0x213   : > { %539 = vpow2.f32 %v397_v31  ;;  %v401_v44 = vmul.f32 %v399_v6, %v281_v39 }
 0x215   : > { %v412_v8 = vsel %vm410_vm3, %v401_v44, 0.0 }
 0x218   : > { %v538_v41 = vpop.eup %537 }
 0x219   : > { %v540_v42 = vpop.eup %539 }
 0x21a   : > { %v400_v45 = vsel %vm292_vm2, %v538_v41, %v540_v42 }
 0x21b   : > { %v402_v46 = vmul.f32 %v400_v45, %v282_v43 }
 0x21d   : > { %v413_v47 = vsel %vm411_vm4, %v402_v46, 0.0 }
 0x21e   : > { %v414_v48 = vadd.f32 %v413_v47, %v412_v8 }
 0x220   : > { %v415_v49 = vrot.slane %v414_v48, 4 }
 0x222   : > { %v416_v58 = vadd.f32 %v415_v49, %v414_v48 }
 0x224   : > { %v417_v50 = vrot.slane %v416_v58, 2 }
 0x226   : > { %v418_v51 = vadd.f32 %v417_v50, %v416_v58 }
 0x228   : > { %v419_v52 = vrot.slane %v418_v51, 1 }
 0x22a   : > { %v420_v53 = vadd.f32 %v419_v52, %v418_v51 }
 0x22c   : > { %422 = vst.msk [vmem:[%s203_s22] sm:$0x1] %vm421_vm5, %v420_v53 }
 0x22d PF: > { %s12_s9 = sadd.s32 1, %s547_s9  }
 0x22e   : > { %p9_p5 = scmp.ge.s32.totalorder %s12_s9, 5  }
 0x230   :  { %11 = sbr.rel (!%p9_p5) target bundleno = 1 (0x1), region = 61 }

</bundles_post_ra>
